<compile_context>
chip_gen: v7x
topology: tpu7x:2x2x1
jax: 0.10.0
libtpu: 0.0.40
codegen_flags: <defaults>
</compile_context>

<pallas_src>
import functools

import jax
import jax.numpy as jnp
from jax.experimental import pallas as pl
from jax.experimental.pallas import tpu as pltpu


def _cdiv(a, b):
    return (a + b - 1) // b


def _round_up(x, m):
    return _cdiv(x, m) * m


def _mlp_kernel(x_ref, w1_ref, b1_ref, w2_ref, b2_ref, w3_ref, b3_ref,
                o_ref, acc_ref, *, compute_dtype):
    """Grid = (row tiles, fc1 K tiles).

    fc1 accumulates across the K axis into an f32 scratch; bias+ReLU and the
    fc2 / fc3 layers run once per row tile on the last K step.
    """
    k = pl.program_id(1)
    nk = pl.num_programs(1)

    @pl.when(k == 0)
    def _():
        acc_ref[...] = jnp.zeros_like(acc_ref)

    # fc1 partial product: cast the x tile to bf16 at the MXU input (VPU cast
    # in VMEM, hidden under the matmul); accumulation stays f32.
    x = x_ref[...].astype(compute_dtype)
    acc_ref[...] += jnp.dot(x, w1_ref[...], preferred_element_type=jnp.float32)

    @pl.when(k == nk - 1)
    def _():
        # fc1 bias + ReLU in f32 (v5e has no bf16 VPU path).
        h1 = jnp.maximum(acc_ref[...] + b1_ref[...], 0.0)
        # dropout1: identity (inference)
        h2 = jnp.dot(h1.astype(compute_dtype), w2_ref[...],
                     preferred_element_type=jnp.float32)
        h2 = jnp.maximum(h2 + b2_ref[...], 0.0)
        # dropout2: identity (inference)
        out = jnp.dot(h2.astype(compute_dtype), w3_ref[...],
                      preferred_element_type=jnp.float32) + b3_ref[...]
        o_ref[...] = out.astype(o_ref.dtype)


def _choose_tiles(M, in_f, hid, n_cls_p, x_itemsize, w_itemsize, budget):
    """Pick (block_rows, block_k): the largest row tile (then the largest fc1
    K tile) whose VMEM footprint fits the per-generation budget."""

    def footprint(br, bk):
        # Grid-invariant blocks (w2, w3, biases) and streamed blocks
        # (x tile, w1 K tile, out tile) are double-buffered by the pipeline;
        # the f32 accumulator scratch and in-kernel temps are counted once.
        invariant = (hid * hid + hid * n_cls_p) * w_itemsize + 2 * (hid + n_cls_p) * 4
        streamed = br * bk * x_itemsize + bk * hid * w_itemsize + br * n_cls_p * 4
        acc = br * hid * 4
        temps = br * hid * 4 + br * max(hid, n_cls_p) * (4 + w_itemsize)
        return 2 * (invariant + streamed) + acc + temps

    # Largest row tile wins (per-grid-step overhead ~0.35us dominates small
    # tiles; fewer row tiles also means fewer full re-reads of w1 when the K
    # axis is tiled), but keep >= 2 row tiles so ("parallel",) can shard rows
    # across both TensorCores on v7x.
    max_br = min(1024, max(8, _round_up(_cdiv(M, 2), 8)))
    br_cands = [b for b in (1024, 512, 256, 128, 64, 32, 16, 8) if b <= max_br] or [8]
    bk_cands = [in_f] + [b for b in (4096, 2048, 1024, 512, 256, 128)
                         if b < in_f and in_f % b == 0]
    for br in br_cands:
        for bk in bk_cands:
            fp = footprint(br, bk)
            if fp <= budget:
                return br, bk, fp
    # TODO(synk): for hidden sizes where even fc2/fc3 weights cannot stay
    # resident, split them into separate pallas_calls (not needed at VGG-head
    # scale on v5e/v6e; tight only on v7x's 64 MiB with hid >~ 4K).
    br, bk = br_cands[-1], bk_cands[-1]
    return br, bk, footprint(br, bk)


def prepare_params(w1, b1, w2, b2, w3, b3, compute_dtype=jnp.bfloat16):
    """One-time parameter prep (call once, NOT per forward): weights stored in
    bf16 (x-major, i.e. transposed PyTorch Linear weights), biases as f32
    (1, N), classes padded to a lane-dense multiple of 128."""
    n_cls = w3.shape[1]
    n_cls_p = _round_up(n_cls, 128)

    def bias2d(b):
        return jnp.asarray(b, jnp.float32).reshape(1, -1)

    w1 = jnp.asarray(w1, compute_dtype)
    w2 = jnp.asarray(w2, compute_dtype)
    w3f = jnp.asarray(w3, jnp.float32)
    b3f = bias2d(b3)
    if n_cls_p != n_cls:
        w3f = jnp.pad(w3f, ((0, 0), (0, n_cls_p - n_cls)))
        b3f = jnp.pad(b3f, ((0, 0), (0, n_cls_p - n_cls)))
    w3 = w3f.astype(compute_dtype)
    return (w1, bias2d(b1), w2, bias2d(b2), w3, b3f), n_cls


@functools.partial(jax.jit,
                   static_argnames=("n_cls", "compute_dtype", "out_dtype",
                                    "vmem_budget_bytes"))
def spike_vgg_classifier(x, w1, b1, w2, b2, w3, b3, *, n_cls,
                         compute_dtype=jnp.bfloat16, out_dtype=jnp.float32,
                         vmem_budget_bytes=48 << 20):
    """Fused Linear -> ReLU -> Linear -> ReLU -> Linear.

    x: [..., in_f] (arbitrary leading dims, e.g. (T, B) timesteps x batch).
    Weights/biases must come from prepare_params(). Returns [..., n_cls].
    """
    lead = x.shape[:-1]
    in_f = x.shape[-1]
    M = 1
    for d in lead:
        M *= d
    x2 = x.reshape(M, in_f)

    hid = w1.shape[1]
    n_cls_p = w3.shape[1]
    assert w1.shape == (in_f, hid) and w2.shape == (hid, hid)
    assert b1.shape == (1, hid) and b2.shape == (1, hid) and b3.shape == (1, n_cls_p)
    assert in_f % 128 == 0 and hid % 128 == 0, \
        "in_features / hidden must be multiples of 128 (MXU lane alignment)"
    assert n_cls_p % 128 == 0 and n_cls <= n_cls_p

    block_rows, block_k, fp = _choose_tiles(
        M, in_f, hid, n_cls_p, x2.dtype.itemsize,
        jnp.dtype(compute_dtype).itemsize, vmem_budget_bytes)

    grid = (_cdiv(M, block_rows), in_f // block_k)
    inv = lambda i, k: (0, 0)   # grid-invariant: DMA'd once, stays resident

    out_p = pl.pallas_call(
        functools.partial(_mlp_kernel, compute_dtype=compute_dtype),
        out_shape=jax.ShapeDtypeStruct((M, n_cls_p), out_dtype),
        grid=grid,
        in_specs=[
            pl.BlockSpec((block_rows, block_k), lambda i, k: (i, k)),  # x tile
            pl.BlockSpec((block_k, hid), lambda i, k: (k, 0)),         # w1 K tile
            pl.BlockSpec((1, hid), inv),                               # b1
            pl.BlockSpec((hid, hid), inv),                             # w2 (resident)
            pl.BlockSpec((1, hid), inv),                               # b2
            pl.BlockSpec((hid, n_cls_p), inv),                         # w3 (resident)
            pl.BlockSpec((1, n_cls_p), inv),                           # b3
        ],
        out_specs=pl.BlockSpec((block_rows, n_cls_p), lambda i, k: (i, 0)),
        scratch_shapes=[pltpu.VMEM((block_rows, hid), jnp.float32)],
        compiler_params=pltpu.CompilerParams(
            dimension_semantics=("parallel", "arbitrary"),
            vmem_limit_bytes=int(fp + (8 << 20)),
        ),
    )(x2, w1, b1, w2, b2, w3, b3)

    return out_p[:, :n_cls].reshape(*lead, n_cls)


def reference(x, w1, b1, w2, b2, w3, b3, compute_dtype=jnp.bfloat16):
    """Pure-JAX reference mirroring the kernel's cast sequence."""
    cd = compute_dtype
    h1 = jnp.dot(x.astype(cd), jnp.asarray(w1, cd), preferred_element_type=jnp.float32)
    h1 = jnp.maximum(h1 + jnp.asarray(b1, jnp.float32).reshape(1, -1), 0.0)
    h2 = jnp.dot(h1.astype(cd), jnp.asarray(w2, cd), preferred_element_type=jnp.float32)
    h2 = jnp.maximum(h2 + jnp.asarray(b2, jnp.float32).reshape(1, -1), 0.0)
    out = jnp.dot(h2.astype(cd), jnp.asarray(w3, cd), preferred_element_type=jnp.float32)
    return out + jnp.asarray(b3, jnp.float32).reshape(1, -1)


if __name__ == "__main__":
    # Small classifier-head shapes; timesteps x batch are stacked into the
    # row dimension so the MXU sees M = T*B rows.
    T, B = 8, 4
    IN_F, HID, N_CLS = 512, 256, 100   # N_CLS not a multiple of 128 -> exercises padding

    key = jax.random.PRNGKey(0)
    kx, k1, k2, k3, kb1, kb2, kb3 = jax.random.split(key, 7)

    x = jax.random.normal(kx, (T, B, IN_F), dtype=jnp.float32)
    w1 = jax.random.normal(k1, (IN_F, HID), jnp.float32) * (2.0 / IN_F) ** 0.5
    b1 = jax.random.normal(kb1, (HID,), jnp.float32) * 0.01      # 1-D biases, like torch
    w2 = jax.random.normal(k2, (HID, HID), jnp.float32) * (2.0 / HID) ** 0.5
    b2 = jax.random.normal(kb2, (HID,), jnp.float32) * 0.01
    w3 = jax.random.normal(k3, (HID, N_CLS), jnp.float32) * (2.0 / HID) ** 0.5
    b3 = jax.random.normal(kb3, (N_CLS,), jnp.float32) * 0.01

    params, n_cls = prepare_params(w1, b1, w2, b2, w3, b3)   # one-time prep

    out = spike_vgg_classifier(x, *params, n_cls=n_cls)
    out = jax.block_until_ready(out)
    assert out.shape == (T, B, N_CLS)

    ref = reference(x.reshape(T * B, IN_F), w1, b1, w2, b2, w3, b3)
    err = float(jnp.max(jnp.abs(out.reshape(T * B, N_CLS) - ref)))
    # bf16 matmul operands -> moderate tolerance (expected precision, not a bug).
    assert err < 2e-2, err

    print("KERNEL_OK")
</pallas_src>

<mosaic_0001>
module attributes {stable_mosaic.version = 11 : i64} {
  func.func @_mlp_kernel(%arg0: i32, %arg1: i32, %arg2: memref<16x512xf32, #tpu.memory_space<vmem>>, %arg3: memref<512x256xbf16, #tpu.memory_space<vmem>>, %arg4: memref<1x256xf32, #tpu.memory_space<vmem>>, %arg5: memref<256x256xbf16, #tpu.memory_space<vmem>>, %arg6: memref<1x256xf32, #tpu.memory_space<vmem>>, %arg7: memref<256x128xbf16, #tpu.memory_space<vmem>>, %arg8: memref<1x128xf32, #tpu.memory_space<vmem>>, %arg9: memref<16x128xf32, #tpu.memory_space<vmem>>, %arg10: memref<16x256xf32, #tpu.memory_space<vmem>>) attributes {dimension_semantics = [#tpu.dimension_semantics<parallel>, #tpu.dimension_semantics<arbitrary>], iteration_bounds = array<i64: 2, 1>, scalar_prefetch = 0 : i64, scratch_operands = 1 : i64, tpu.core_type = #tpu.core_type<tc>, window_params = [{transform_indices = @transform_0, window_bounds = array<i64: 16, 512>}, {transform_indices = @transform_1, window_bounds = array<i64: 512, 256>}, {pipeline_mode = #tpu.pipeline_mode<synchronous>, transform_indices = @transform_2, window_bounds = array<i64: 1, 256>}, {pipeline_mode = #tpu.pipeline_mode<synchronous>, transform_indices = @transform_3, window_bounds = array<i64: 256, 256>}, {pipeline_mode = #tpu.pipeline_mode<synchronous>, transform_indices = @transform_4, window_bounds = array<i64: 1, 256>}, {pipeline_mode = #tpu.pipeline_mode<synchronous>, transform_indices = @transform_5, window_bounds = array<i64: 256, 128>}, {pipeline_mode = #tpu.pipeline_mode<synchronous>, transform_indices = @transform_6, window_bounds = array<i64: 1, 128>}, {transform_indices = @transform_7, window_bounds = array<i64: 16, 128>}]} {
    %c0_i32 = arith.constant 0 : i32
    %0 = arith.cmpi eq, %arg1, %c0_i32 : i32
    %1 = arith.extui %0 : i1 to i32
    %c0_i32_0 = arith.constant 0 : i32
    %2 = arith.cmpi ne, %1, %c0_i32_0 : i32
    scf.if %2 {
      %cst_10 = arith.constant 0.000000e+00 : f32
      %13 = vector.broadcast %cst_10 : f32 to vector<16x256xf32>
      %c0_11 = arith.constant 0 : index
      %c0_12 = arith.constant 0 : index
      %14 = vector.load %arg10[%c0_11, %c0_12] : memref<16x256xf32, #tpu.memory_space<vmem>>, vector<16x256xf32>
      tpu.vector_store %arg10[%c0_11, %c0_12], %13 {strides = array<i32>} : memref<16x256xf32, #tpu.memory_space<vmem>>, vector<16x256xf32>,
    } else {
    }
    %c0 = arith.constant 0 : index
    %c0_1 = arith.constant 0 : index
    %3 = vector.load %arg2[%c0, %c0_1] : memref<16x512xf32, #tpu.memory_space<vmem>>, vector<16x512xf32>
    %4 = arith.truncf %3 : vector<16x512xf32> to vector<16x512xbf16>
    %c0_2 = arith.constant 0 : index
    %c0_3 = arith.constant 0 : index
    %5 = vector.load %arg10[%c0_2, %c0_3] : memref<16x256xf32, #tpu.memory_space<vmem>>, vector<16x256xf32>
    %c0_4 = arith.constant 0 : index
    %c0_5 = arith.constant 0 : index
    %6 = vector.load %arg3[%c0_4, %c0_5] : memref<512x256xbf16, #tpu.memory_space<vmem>>, vector<512x256xbf16>
    %cst = arith.constant dense<0.000000e+00> : vector<16x256xf32>
    %7 = tpu.matmul %4, %6, %cst {dimension_numbers = #tpu.dot_dimension_numbers<[1], [0], [0], [1], [0, 0, 1, 1], [], []>} : vector<16x512xbf16>, vector<512x256xbf16>, vector<16x256xf32> -> vector<16x256xf32>
    %8 = arith.addf %5, %7 : vector<16x256xf32>
    %c0_6 = arith.constant 0 : index
    %c0_7 = arith.constant 0 : index
    %9 = vector.load %arg10[%c0_6, %c0_7] : memref<16x256xf32, #tpu.memory_space<vmem>>, vector<16x256xf32>
    tpu.vector_store %arg10[%c0_6, %c0_7], %8 {strides = array<i32>} : memref<16x256xf32, #tpu.memory_space<vmem>>, vector<16x256xf32>,
    %c0_i32_8 = arith.constant 0 : i32
    %10 = arith.cmpi eq, %arg1, %c0_i32_8 : i32
    %11 = arith.extui %10 : i1 to i32
    %c0_i32_9 = arith.constant 0 : i32
    %12 = arith.cmpi ne, %11, %c0_i32_9 : i32
    scf.if %12 {
      %c0_10 = arith.constant 0 : index
      %c0_11 = arith.constant 0 : index
      %13 = vector.load %arg10[%c0_10, %c0_11] : memref<16x256xf32, #tpu.memory_space<vmem>>, vector<16x256xf32>
      %c0_12 = arith.constant 0 : index
      %c0_13 = arith.constant 0 : index
      %14 = vector.load %arg4[%c0_12, %c0_13] : memref<1x256xf32, #tpu.memory_space<vmem>>, vector<1x256xf32>
      %15 = vector.broadcast %14 : vector<1x256xf32> to vector<16x256xf32>
      %16 = arith.addf %13, %15 : vector<16x256xf32>
      %cst_14 = arith.constant 0.000000e+00 : f32
      %17 = vector.broadcast %cst_14 : f32 to vector<16x256xf32>
      %18 = arith.maximumf %16, %17 : vector<16x256xf32>
      %19 = arith.truncf %18 : vector<16x256xf32> to vector<16x256xbf16>
      %c0_15 = arith.constant 0 : index
      %c0_16 = arith.constant 0 : index
      %20 = vector.load %arg5[%c0_15, %c0_16] : memref<256x256xbf16, #tpu.memory_space<vmem>>, vector<256x256xbf16>
      %cst_17 = arith.constant dense<0.000000e+00> : vector<16x256xf32>
      %21 = tpu.matmul %19, %20, %cst_17 {dimension_numbers = #tpu.dot_dimension_numbers<[1], [0], [0], [1], [0, 0, 1, 1], [], []>} : vector<16x256xbf16>, vector<256x256xbf16>, vector<16x256xf32> -> vector<16x256xf32>
      %c0_18 = arith.constant 0 : index
      %c0_19 = arith.constant 0 : index
      %22 = vector.load %arg6[%c0_18, %c0_19] : memref<1x256xf32, #tpu.memory_space<vmem>>, vector<1x256xf32>
      %23 = vector.broadcast %22 : vector<1x256xf32> to vector<16x256xf32>
      %24 = arith.addf %21, %23 : vector<16x256xf32>
      %cst_20 = arith.constant 0.000000e+00 : f32
      %25 = vector.broadcast %cst_20 : f32 to vector<16x256xf32>
      %26 = arith.maximumf %24, %25 : vector<16x256xf32>
      %27 = arith.truncf %26 : vector<16x256xf32> to vector<16x256xbf16>
      %c0_21 = arith.constant 0 : index
      %c0_22 = arith.constant 0 : index
      %28 = vector.load %arg7[%c0_21, %c0_22] : memref<256x128xbf16, #tpu.memory_space<vmem>>, vector<256x128xbf16>
      %cst_23 = arith.constant dense<0.000000e+00> : vector<16x128xf32>
      %29 = tpu.matmul %27, %28, %cst_23 {dimension_numbers = #tpu.dot_dimension_numbers<[1], [0], [0], [1], [0, 0, 1, 1], [], []>} : vector<16x256xbf16>, vector<256x128xbf16>, vector<16x128xf32> -> vector<16x128xf32>
      %c0_24 = arith.constant 0 : index
      %c0_25 = arith.constant 0 : index
      %30 = vector.load %arg8[%c0_24, %c0_25] : memref<1x128xf32, #tpu.memory_space<vmem>>, vector<1x128xf32>
      %31 = vector.broadcast %30 : vector<1x128xf32> to vector<16x128xf32>
      %32 = arith.addf %29, %31 : vector<16x128xf32>
      %c0_26 = arith.constant 0 : index
      %c0_27 = arith.constant 0 : index
      %33 = vector.load %arg9[%c0_26, %c0_27] : memref<16x128xf32, #tpu.memory_space<vmem>>, vector<16x128xf32>
      tpu.vector_store %arg9[%c0_26, %c0_27], %32 {strides = array<i32>} : memref<16x128xf32, #tpu.memory_space<vmem>>, vector<16x128xf32>,
    } else {
    }
    return
  }
  func.func @transform_0(%arg0: i32, %arg1: i32) -> (i32, i32) {
    %c0_i32 = arith.constant 0 : i32
    return %arg0, %arg1 : i32, i32
  }
  func.func @transform_1(%arg0: i32, %arg1: i32) -> (i32, i32) {
    %c0_i32 = arith.constant 0 : i32
    %c0_i32_0 = arith.constant 0 : i32
    return %arg1, %c0_i32 : i32, i32
  }
  func.func @transform_2(%arg0: i32, %arg1: i32) -> (i32, i32) {
    %c0_i32 = arith.constant 0 : i32
    %c0_i32_0 = arith.constant 0 : i32
    %c0_i32_1 = arith.constant 0 : i32
    return %c0_i32, %c0_i32_0 : i32, i32
  }
  func.func @transform_3(%arg0: i32, %arg1: i32) -> (i32, i32) {
    %c0_i32 = arith.constant 0 : i32
    %c0_i32_0 = arith.constant 0 : i32
    %c0_i32_1 = arith.constant 0 : i32
    return %c0_i32, %c0_i32_0 : i32, i32
  }
  func.func @transform_4(%arg0: i32, %arg1: i32) -> (i32, i32) {
    %c0_i32 = arith.constant 0 : i32
    %c0_i32_0 = arith.constant 0 : i32
    %c0_i32_1 = arith.constant 0 : i32
    return %c0_i32, %c0_i32_0 : i32, i32
  }
  func.func @transform_5(%arg0: i32, %arg1: i32) -> (i32, i32) {
    %c0_i32 = arith.constant 0 : i32
    %c0_i32_0 = arith.constant 0 : i32
    %c0_i32_1 = arith.constant 0 : i32
    return %c0_i32, %c0_i32_0 : i32, i32
  }
  func.func @transform_6(%arg0: i32, %arg1: i32) -> (i32, i32) {
    %c0_i32 = arith.constant 0 : i32
    %c0_i32_0 = arith.constant 0 : i32
    %c0_i32_1 = arith.constant 0 : i32
    return %c0_i32, %c0_i32_0 : i32, i32
  }
  func.func @transform_7(%arg0: i32, %arg1: i32) -> (i32, i32) {
    %c0_i32 = arith.constant 0 : i32
    %c0_i32_0 = arith.constant 0 : i32
    return %arg0, %c0_i32 : i32, i32
  }
}

</mosaic_0001>

<bundles_post_ra>
// kernel: spike_vgg_classifier.1
= control target key start
LH: loop header
LB: loop body
LE: loop exit
PB: predicated region body
PF: predicated region fallthrough
CT: control target
= control target key end

     0   :  { %12 = vsyncpa [#allocation4], 0  ;;  %s2326_s0 = inlined_call_operand.vmem [shape: f32[32,512], index: 0, kind: input, shape index: {}]   ;;  %s2327_s1 = inlined_call_operand.hbm [shape: bf16[512,256], index: 1, kind: input, shape index: {}]   ;;  %s2328_s2 = inlined_call_operand.vmem [shape: f32[1,256], index: 2, kind: input, shape index: {}]   ;;  %s2329_s3 = inlined_call_operand.vmem [shape: bf16[256,256], index: 3, kind: input, shape index: {}]   ;;  %s2330_s4 = inlined_call_operand.vmem [shape: f32[1,256], index: 4, kind: input, shape index: {}]   ;;  %s2331_s5 = inlined_call_operand.hbm [shape: bf16[256,128], index: 5, kind: input, shape index: {}]   ;;  %s2332_s6 = inlined_call_operand.vmem [shape: f32[1,128], index: 6, kind: input, shape index: {}]   ;;  %s2333_s7 = inlined_call_operand.hbm [shape: f32[32,128], index: 7, kind: output, shape index: {}]  }
   0x1   :  { %13 = vsyncpa [#allocation7], 0 }
   0x2   :  { %14 = vsyncpa [#allocation5], 0 }
   0x3   :  { %16 = vsyncpa [#allocation5 + $0x1], 0  ;;  %s2022_s24 = smov 0   ;;  %s2024_s25 = smov 0  }
   0x4   :  { %s2026_s26 = smov 0   ;;  %s2028_s27 = smov 0  }
   0x5   :  { %s2030_s28 = smov 0   ;;  %s2032_s29 = smov 0  }
   0x6 LB: > { %2340 = sst [smem:[#allocation12_spill]] %s1967_s28  ;;  %s1428_s30 = sadd.s32 4294967295, %s1971_s29   ;;  %s1971_s29 = sphi %s2032_s29, %s22_s29   ;;  %s1967_s28 = sphi %s2030_s28, %s2354_s28   ;;  %s1963_s27 = sphi %s2028_s27, %s2353_s27   ;;  %s1959_s26 = sphi %s2026_s26, %s2357_s26   ;;  %s1955_s25 = sphi %s2024_s25, %s2356_s25   ;;  %s1951_s24 = sphi %s2022_s24, %s2355_s24  }
   0x7   : > { %s1429_s8 = sadd.s32 4294967294, %s1971_s29   ;;  %s34_s9 = sadd.s32 1, %s1967_s28 }
   0x8   : > { %s200_s10 = sadd.s32 1, %s1959_s26  ;;  %p36_p0 = scmp.ge.s32.totalorder %s34_s9, 2 }
   0x9   : > { %p210_p1 = scmp.ne.s32.totalorder %s1959_s26, %s1955_s25  ;;  %p211_p2 = scmp.eq.s32.totalorder %s1428_s30, 1 }
   0xa   : > { %p216_p3 = scmp.ne.s32.totalorder %s1955_s25, %s1951_s24  ;;  %s2359_s9 = smov (%p36_p0, %s34_s9), 0 }
   0xb   : > { %2341 = sst [smem:[#allocation13_spill]] %s2359_s9  ;;  %p2062_p4 = por %p211_p2, %p210_p1 }
   0xc   : > { %p217_p5 = scmp.eq.s32.totalorder %s1429_s8, 1  ;;  %s197_s12 = ssub.s32 %s1967_s28, %s2359_s9 }
   0xd   : > { %s2342_s11 = scalar_select %p2062_p4, 1, 0 }
   0xe   : > { %p1430_p6 = scmp.ge.s32.totalorder %s1971_s29, 1  ;;  %p198_p7 = scmp.eq.s32.totalorder %s197_s12, 0 }
   0xf   : > { %p2069_p8 = por %p217_p5, %p216_p3  ;;  %p224_p9 = scmp.lt.s32.totalorder %s1971_s29, 3 }
  0x10   : > { %s2075_s14 = scalar_select %p198_p7, %s1959_s26, %s200_s10  }
  0x11   : > { %s2343_s13 = scalar_select %p2069_p8, 1, 0 }
  0x12   : > { %2344 = sst [smem:[#allocation14_spill]] %s2075_s14  ;;  %p2077_p10 = pnand %p1430_p6, %p224_p9 }
  0x13   : > { %p2081_p11 = scmp.eq.s32.totalorder %s1428_s30, 0  ;;  %s1973_s17 = smov [#allocation3]  }
  0x14   : > { %s2345_s15 = scalar_select %p2077_p10, 1, 0 }
  0x15   : > { %s2346_s16 = scalar_select %p2081_p11, 1, 0 }
  0x16   : > { %p1597_p12 = pneg %p2077_p10  ;;  %s240_s18 = sshll.u32 %s1973_s17, 4  ;;  %s241_s18 = int_to_ptr.vmem [resolvable:$true] %s240_s18 }
  0x17   : > { %s1974_s20 = smov [#allocation6]   ;;  %s1829_s30 = scalar_lea.hbm %s2327_s1, 8192 }
  0x18   : > { %p2089_p13 = pnand %p2081_p11, %p1597_p12  ;;  %s262_s21 = sshll.u32 %s1974_s20, 4  ;;  %s2093_s21 = int_to_ptr.vmem [resolvable:$true] %s262_s21 }
  0x19   : > { %p1830_p0 = scmp.ne.s32.totalorder %s2327_s1, %s1829_s30  ;;  %p1836_p5 = scmp.lt.u32.totalorder %s1829_s30, %s2327_s1 }
  0x1a   : > { %p1831_p1 = pneg %p2089_p13 }
  0x1c   : > { %p1832_p2 = pnand %p1831_p1, %p1830_p0 }
  0x1e   : > { %p1833_p3 = pneg %p1832_p2 }
  0x20   : > { %p1838_p6 = pnand %p1836_p5, %p1833_p3 }
  0x22   : > { %1841 = shalt.err (!%p1838_p6)
}
  0x23   : > { %s1842_s20 = scalar_lea.vmem %s241_s18, 8192  ;;  %p1850_p8 = scmp.lt.s32.totalorder %s241_s18, %s241_s18 }
  0x24   : > { %p1843_p7 = scmp.ne.s32.totalorder %s241_s18, %s1842_s20  ;;  %p1851_p4 = scmp.lt.s32.totalorder %s1842_s20, %s1842_s20 }
  0x26   : > { %p1845_p9 = pnand %p1843_p7, %p1831_p1  ;;  %p1852_p11 = por %p1851_p4, %p1850_p8 }
  0x28   : > { %p1846_p12 = pneg %p1845_p9 }
  0x2a   : > { %p1853_p10 = pnand %p1852_p11, %p1846_p12 }
  0x2c   : > { %1856 = shalt.err (!%p1853_p10)
}
  0x2d   : > { %s1975_s22 = smov 128   ;;  %s1976_s23 = smov 8  }
  0x2e   : > { %1600 = dma.hbm_to_vmem [thread:$0]  (!%p2089_p13), %s2327_s1, 8192, %s241_s18, [#allocation4], %s1975_s22, %s1975_s22, %s1976_s23  }
  0x2f   : > { %s1857_s17 = scalar_lea.hbm %s2331_s5, 2048 }
  0x30   : > { %p1858_p0 = scmp.ne.s32.totalorder %s2331_s5, %s1857_s17  ;;  %p1864_p10 = scmp.lt.u32.totalorder %s1857_s17, %s2331_s5 }
  0x32   : > { %p1860_p4 = pnand %p1858_p0, %p1831_p1 }
  0x34   : > { %p1861_p8 = pneg %p1860_p4 }
  0x36   : > { %p1866_p11 = pnand %p1864_p10, %p1861_p8 }
  0x38   : > { %1869 = shalt.err (!%p1866_p11)
}
  0x39   : > { %s1870_s18 = scalar_lea.vmem %s2093_s21, 2048  ;;  %p1878_p6 = scmp.lt.s32.totalorder %s2093_s21, %s2093_s21 }
  0x3a   : > { %p1871_p2 = scmp.ne.s32.totalorder %s2093_s21, %s1870_s18  ;;  %p1879_p7 = scmp.lt.s32.totalorder %s1870_s18, %s1870_s18 }
  0x3c   : > { %p1873_p3 = pnand %p1871_p2, %p1831_p1  ;;  %p1880_p9 = por %p1879_p7, %p1878_p6 }
  0x3e   : > { %p1874_p5 = pneg %p1873_p3 }
  0x40   : > { %p1881_p12 = pnand %p1880_p9, %p1874_p5 }
  0x42   : > { %1884 = shalt.err (!%p1881_p12)
}
  0x43   : > { %s1977_s28 = smov 64   ;;  %s1978_s9 = smov 4  }
  0x44   : > { %1603 = dma.hbm_to_vmem [thread:$0]  (!%p2089_p13), %s2331_s5, 2048, %s2093_s21, [#allocation7], %s1977_s28, %s1977_s28, %s1978_s9  }
  0x45   : > { %p2348_p0 = scmp.ne.s32.totalorder %s2345_s15, 0 }
  0x46   : > { %p2349_p1 = scmp.ne.s32.totalorder (!%p2348_p0), %s2346_s16, 0 }
  0x47   : > { %296 = sbr.rel (%p2348_p0) target bundleno = 888 (0x378), region = 48 }
  0x4e   : > { %1938 = dma.done.wait (%p2349_p1), [#allocation4], 8192  }
  0x4f   : > { %1940 = vsyncadd (%p2349_p1), [#allocation4], 4294959104 }
  0x50   : > { %1942 = dma.done.wait (%p2349_p1), [#allocation7], 2048  }
  0x51   : > { %1944 = vsyncadd (%p2349_p1), [#allocation7], 4294965248  ;;  %v1669_v0 = vld [vmem:[#allocation3 + $0x4] ss:$8 sps:$4 sm:$0xff]   ;;  %v1671_v1 = vld [vmem:[#allocation3] ss:$8 sps:$4 sm:$0xff]  }
  0x52   : > { %760 = vmatprep.subr.bf16.mxu0 %v1669_v0  ;;  %v1672_v2 = vld [vmem:[#allocation3 + $0x14] ss:$8 sps:$4 sm:$0xff]   ;;  %v1674_v3 = vld [vmem:[#allocation3 + $0x10] ss:$8 sps:$4 sm:$0xff]   ;;  %v1675_v4 = vld [vmem:[#allocation3 + $0x24] ss:$8 sps:$4 sm:$0xff]  }
  0x53   : > { %761 = vmatpush1.bf16.msra.mxu0 %v1671_v1  ;;  %s1438_s15 = sshll.u32 %s1963_s27, 1  ;;  %v1677_v5 = vld [vmem:[#allocation3 + $0x20] ss:$8 sps:$4 sm:$0xff]   ;;  %v1678_v6 = vld [vmem:[#allocation3 + $0x34] ss:$8 sps:$4 sm:$0xff]   ;;  %s334_s28 = sand.u32 1, %s1955_s25  }
  0x54   : > { %762 = vmatprep.subr.bf16.mxu0 %v1672_v2  ;;  %p339_p13 = scmp.lt.s32.totalorder %s1438_s15, 3  ;;  %v1680_v7 = vld [vmem:[#allocation3 + $0x30] ss:$8 sps:$4 sm:$0xff]   ;;  %v1681_v8 = vld [vmem:[#allocation3 + $0x44] ss:$8 sps:$4 sm:$0xff]   ;;  %s1437_s9 = sshll.u32 %s334_s28, 4 }
  0x55   : > { %v1683_v9 = vld [vmem:[#allocation3 + $0x40] ss:$8 sps:$4 sm:$0xff]   ;;  %v1684_v10 = vld [vmem:[#allocation3 + $0x54] ss:$8 sps:$4 sm:$0xff]   ;;  %v1686_v11 = vld [vmem:[#allocation3 + $0x50] ss:$8 sps:$4 sm:$0xff]  }
  0x56   : > { %s2361_s15 = smov (!%p339_p13, %s1438_s15), 3  ;;  %v1687_v12 = vld [vmem:[#allocation3 + $0x64] ss:$8 sps:$4 sm:$0xff]   ;;  %v1689_v16 = vld [vmem:[#allocation3 + $0x60] ss:$8 sps:$4 sm:$0xff]   ;;  %s1560_s19 = sshll.u32 %s1963_s27, 8 }
  0x57   : > { %763 = vmatpush1.bf16.msra.mxu0 %v1674_v3  ;;  %s1559_s16 = sshll.u32 %s2361_s15, 5  ;;  %v1690_v17 = vld [vmem:[#allocation3 + $0x74] ss:$8 sps:$4 sm:$0xff]   ;;  %v1692_v18 = vld [vmem:[#allocation3 + $0x70] ss:$8 sps:$4 sm:$0xff]   ;;  %s336_s15 = scalar_lea.vmem [#allocation8], %s1437_s9 }
  0x58   : > { %764 = vmatprep.subr.bf16.mxu0 %v1675_v4  ;;  %s2156_s23 = scalar_lea.vmem %s2326_s0, %s1559_s16  ;;  %v1693_v19 = vld [vmem:[#allocation3 + $0x84] ss:$8 sps:$4 sm:$0xff]   ;;  %v1695_v20 = vld [vmem:[#allocation3 + $0x80] ss:$8 sps:$4 sm:$0xff]   ;;  %v1696_v21 = vld [vmem:[#allocation3 + $0x94] ss:$8 sps:$4 sm:$0xff]   ;;  %s2278_s30 = scalar_lea.hbm %s2333_s7, %s1560_s19 }
  0x59   : > { %v361_v13 = vld [vmem:[%s2156_s23 + $0x8] sm:$0xff]  ;;  %v1698_v22 = vld [vmem:[#allocation3 + $0x90] ss:$8 sps:$4 sm:$0xff]   ;;  %v1702_v25 = vld [vmem:[#allocation3 + $0xb4] ss:$8 sps:$4 sm:$0xff]   ;;  %s1328_s16 = sshll.u32 %s336_s15, 4  ;;  %s2273_s16 = int_to_ptr.vmem [resolvable:$true] %s1328_s16 }
  0x5a   : > { %v365_v14 = vld [vmem:[%s2156_s23 + $0x28] sm:$0xff]  ;;  %v1704_v26 = vld [vmem:[#allocation3 + $0xb0] ss:$8 sps:$4 sm:$0xff]   ;;  %v1768_v31 = vld [vmem:[%s2329_s3 + $0x14] ss:$8 sps:$4 sm:$0xff]   ;;  %s2280_s8 = scalar_lea.sflag [#allocation5], %s334_s28 }
  0x5b   : > { %765 = vmatpush1.bf16.msra.mxu0 %v1677_v5  ;;  %v369_v15 = vpack.c.bf16 %v365_v14, %v361_v13  ;;  %v1699_v23 = vld [vmem:[#allocation3 + $0xa4] ss:$8 sps:$4 sm:$0xff]   ;;  %v1701_v24 = vld [vmem:[#allocation3 + $0xa0] ss:$8 sps:$4 sm:$0xff]   ;;  %v1708_v32 = vld [vmem:[#allocation3 + $0xd4] ss:$8 sps:$4 sm:$0xff]  }
  0x5c   : > { %766 = vmatprep.subr.bf16.mxu0 %v1678_v6  ;;  %v1705_v27 = vld [vmem:[#allocation3 + $0xc4] ss:$8 sps:$4 sm:$0xff]   ;;  %v1767_v29 = vld [vmem:[%s2329_s3] ss:$8 sps:$4 sm:$0xff]   ;;  %v1770_v33 = vld [vmem:[%s2329_s3 + $0x10] ss:$8 sps:$4 sm:$0xff]  }
  0x5d   : > { %792 = vmatprep.mubr.bf16.mxu0 %v369_v15  ;;  %v1765_v28 = vld [vmem:[%s2329_s3 + $0x4] ss:$8 sps:$4 sm:$0xff]   ;;  %v1707_v30 = vld [vmem:[#allocation3 + $0xc0] ss:$8 sps:$4 sm:$0xff]   ;;  %v1710_v35 = vld [vmem:[#allocation3 + $0xd0] ss:$8 sps:$4 sm:$0xff]  }
  0x5e   : > { %1087 = vmatprep.subr.bf16.mxu1 %v1765_v28  ;;  %v1771_v34 = vld [vmem:[%s2329_s3 + $0x24] ss:$8 sps:$4 sm:$0xff]   ;;  %v1773_v37 = vld [vmem:[%s2329_s3 + $0x20] ss:$8 sps:$4 sm:$0xff]   ;;  %v1774_v38 = vld [vmem:[%s2329_s3 + $0x34] ss:$8 sps:$4 sm:$0xff]  }
  0x5f   : > { %767 = vmatpush1.bf16.msra.mxu0 %v1680_v7  ;;  %1088 = vmatpush1.bf16.msra.mxu1 %v1767_v29  ;;  %v1711_v36 = vld [vmem:[#allocation3 + $0xe4] ss:$8 sps:$4 sm:$0xff]   ;;  %v1713_v39 = vld [vmem:[#allocation3 + $0xe0] ss:$8 sps:$4 sm:$0xff]   ;;  %v1714_v40 = vld [vmem:[#allocation3 + $0xf4] ss:$8 sps:$4 sm:$0xff]  }
  0x60   : > { %768 = vmatprep.subr.bf16.mxu0 %v1681_v8  ;;  %1089 = vmatprep.subr.bf16.mxu1 %v1768_v31  ;;  %v1716_v41 = vld [vmem:[#allocation3 + $0xf0] ss:$8 sps:$4 sm:$0xff]   ;;  %v1719_v43 = vld [vmem:[#allocation3 + $0x104] ss:$8 sps:$4 sm:$0xff]   ;;  %v1717_v49 = vld [vmem:[#allocation3 + $0x100] ss:$8 sps:$4 sm:$0xff]  }
  0x61   : > { %v1776_v42 = vld [vmem:[%s2329_s3 + $0x30] ss:$8 sps:$4 sm:$0xff]   ;;  %v360_v44 = vld [vmem:[%s2156_s23] sm:$0xff]  ;;  %v1722_v52 = vld [vmem:[#allocation3 + $0x114] ss:$8 sps:$4 sm:$0xff]   ;;  %s1885_s10 = scalar_lea.vmem %s2273_s16, 256 }
  0x62   : > { %v1777_v45 = vld [vmem:[%s2329_s3 + $0x44] ss:$8 sps:$4 sm:$0xff]   ;;  %v363_v47 = vld [vmem:[%s2156_s23 + $0x18] sm:$0xff]  ;;  %v1779_v50 = vld [vmem:[%s2329_s3 + $0x40] ss:$8 sps:$4 sm:$0xff]   ;;  %p1886_p4 = scmp.ne.s32.totalorder %s2273_s16, %s1885_s10  ;;  %p2350_p8 = scmp.ne.s32.totalorder %s2342_s11, 0 }
  0x63   : > { %769 = vmatpush1.bf16.msra.mxu0 %v1683_v9  ;;  %1090 = vmatpush1.bf16.msra.mxu1 %v1770_v33  ;;  %v364_v46 = vld [vmem:[%s2156_s23 + $0x20] sm:$0xff]  ;;  %v367_v48 = vld [vmem:[%s2156_s23 + $0x38] sm:$0xff]  ;;  %s1979_s27 = smov [#allocation8]  }
  0x64   : > { %770 = vmatprep.subr.bf16.mxu0 %v1684_v10  ;;  %1091 = vmatprep.subr.bf16.mxu1 %v1771_v34  ;;  %v368_v51 = vpack.c.bf16 %v364_v46, %v360_v44  ;;  %v1780_v53 = vld [vmem:[%s2329_s3 + $0x54] ss:$8 sps:$4 sm:$0xff]   ;;  %v371_v54 = vpack.c.bf16 %v367_v48, %v363_v47  ;;  %v1782_v55 = vld [vmem:[%s2329_s3 + $0x50] ss:$8 sps:$4 sm:$0xff]   ;;  %v1783_v56 = vld [vmem:[%s2329_s3 + $0x64] ss:$8 sps:$4 sm:$0xff]   ;;  %p1887_p10 = pnand %p1886_p4, %p2350_p8 }
  0x65   : > { %v1720_v57 = vld [vmem:[#allocation3 + $0x110] ss:$8 sps:$4 sm:$0xff]   ;;  %v1725_v58 = vld [vmem:[#allocation3 + $0x124] ss:$8 sps:$4 sm:$0xff]   ;;  %v1785_v59 = vld [vmem:[%s2329_s3 + $0x60] ss:$8 sps:$4 sm:$0xff]  }
  0x66   : > { %v1786_v60 = vld [vmem:[%s2329_s3 + $0x74] ss:$8 sps:$4 sm:$0xff]   ;;  %v1723_v61 = vld [vmem:[#allocation3 + $0x120] ss:$8 sps:$4 sm:$0xff]   ;;  %v1788_v63 = vld [vmem:[%s2329_s3 + $0x70] ss:$8 sps:$4 sm:$0xff]   ;;  %p1888_p11 = pneg %p1887_p10 }
  0x67   : > { %771 = vmatpush1.bf16.msra.mxu0 %v1686_v11  ;;  %1092 = vmatpush1.bf16.msra.mxu1 %v1773_v37  ;;  %v1728_v62 = vld [vmem:[#allocation3 + $0x134] ss:$8 sps:$4 sm:$0xff]   ;;  %v1789_v0 = vld [vmem:[%s2329_s3 + $0x84] ss:$8 sps:$4 sm:$0xff]   ;;  %v1726_v1 = vld [vmem:[#allocation3 + $0x130] ss:$8 sps:$4 sm:$0xff]  }
  0x68   : > { %772 = vmatprep.subr.bf16.mxu0 %v1687_v12  ;;  %1093 = vmatprep.subr.bf16.mxu1 %v1774_v38  ;;  %v1731_v2 = vld [vmem:[#allocation3 + $0x144] ss:$8 sps:$4 sm:$0xff]   ;;  %v1791_v3 = vld [vmem:[%s2329_s3 + $0x80] ss:$8 sps:$4 sm:$0xff]   ;;  %v1792_v4 = vld [vmem:[%s2329_s3 + $0x94] ss:$8 sps:$4 sm:$0xff]  }
  0x69   : > { %v1729_v5 = vld [vmem:[#allocation3 + $0x140] ss:$8 sps:$4 sm:$0xff]   ;;  %v1734_v6 = vld [vmem:[#allocation3 + $0x154] ss:$8 sps:$4 sm:$0xff]   ;;  %v1794_v7 = vld [vmem:[%s2329_s3 + $0x90] ss:$8 sps:$4 sm:$0xff]  }
  0x6a   : > { %v1795_v8 = vld [vmem:[%s2329_s3 + $0xa4] ss:$8 sps:$4 sm:$0xff]   ;;  %v1732_v9 = vld [vmem:[#allocation3 + $0x150] ss:$8 sps:$4 sm:$0xff]   ;;  %v1797_v11 = vld [vmem:[%s2329_s3 + $0xa0] ss:$8 sps:$4 sm:$0xff]  }
  0x6b   : > { %773 = vmatpush1.bf16.msra.mxu0 %v1689_v16  ;;  %1094 = vmatpush1.bf16.msra.mxu1 %v1776_v42  ;;  %v1737_v10 = vld [vmem:[#allocation3 + $0x164] ss:$8 sps:$4 sm:$0xff]   ;;  %v1798_v12 = vld [vmem:[%s2329_s3 + $0xb4] ss:$8 sps:$4 sm:$0xff]   ;;  %v1735_v13 = vld [vmem:[#allocation3 + $0x160] ss:$8 sps:$4 sm:$0xff]  }
  0x6c   : > { %774 = vmatprep.subr.bf16.mxu0 %v1690_v17  ;;  %1095 = vmatprep.subr.bf16.mxu1 %v1777_v45  ;;  %v1740_v14 = vld [vmem:[#allocation3 + $0x174] ss:$8 sps:$4 sm:$0xff]   ;;  %v1800_v15 = vld [vmem:[%s2329_s3 + $0xb0] ss:$8 sps:$4 sm:$0xff]   ;;  %v1801_v16 = vld [vmem:[%s2329_s3 + $0xc4] ss:$8 sps:$4 sm:$0xff]   ;;  %v863_v45 = vlaneseq }
  0x6d   : > { %v1738_v17 = vld [vmem:[#allocation3 + $0x170] ss:$8 sps:$4 sm:$0xff]   ;;  %v1755_v28 = vld [vmem:[#allocation3 + $0x1c4] ss:$8 sps:$4 sm:$0xff]   ;;  %v1753_v29 = vld [vmem:[#allocation3 + $0x1c0] ss:$8 sps:$4 sm:$0xff]  }
  0x6e   : > { %v1756_v31 = vld [vmem:[#allocation3 + $0x1d0] ss:$8 sps:$4 sm:$0xff]   ;;  %v1759_v33 = vld [vmem:[#allocation3 + $0x1e0] ss:$8 sps:$4 sm:$0xff]   ;;  %v1764_v34 = vld [vmem:[#allocation3 + $0x1f4] ss:$8 sps:$4 sm:$0xff]  }
  0x6f   : > { %775 = vmatpush1.bf16.msra.mxu0 %v1692_v18  ;;  %1096 = vmatpush1.bf16.msra.mxu1 %v1779_v50  ;;  %v1743_v18 = vld [vmem:[#allocation3 + $0x184] ss:$8 sps:$4 sm:$0xff]   ;;  %v366_v37 = vld [vmem:[%s2156_s23 + $0x30] sm:$0xff]  ;;  %v864_v46 = vshrl.u32 %v863_v45, 7  ;;  %v861_v48 = vld [vmem:[%s2328_s2] sm:$0x3] }
  0x70   : > { %776 = vmatprep.subr.bf16.mxu0 %v1693_v19  ;;  %1097 = vmatprep.subr.bf16.mxu1 %v1780_v53  ;;  %v1803_v19 = vld [vmem:[%s2329_s3 + $0xc0] ss:$8 sps:$4 sm:$0xff]   ;;  %v1810_v42 = vld [vmem:[%s2329_s3 + $0xf4] ss:$8 sps:$4 sm:$0xff]   ;;  %s1889_s12 = sshll.u32 %s1979_s27, 4  ;;  %s1890_s12 = int_to_ptr.vmem [resolvable:$false] %s1889_s12 }
  0x71   : > { %v1813_v44 = vld [vmem:[#allocation6 + $0x40] sm:$0xff]   ;;  %v865_v47 = vsub.s32 0, %v864_v46  ;;  %s1891_s17 = scalar_lea.vmem %s1890_s12, 512  ;;  %p1892_p2 = scmp.lt.s32.totalorder %s2273_s16, %s1890_s12 }
  0x72   : > { %p1893_p3 = scmp.lt.s32.totalorder %s1891_s17, %s1885_s10 }
  0x73   : > { %777 = vmatpush1.bf16.msra.mxu0 %v1695_v20  ;;  %1098 = vmatpush1.bf16.msra.mxu1 %v1782_v55  ;;  %v1804_v20 = vld [vmem:[%s2329_s3 + $0xd4] ss:$8 sps:$4 sm:$0xff]   ;;  %v866_v50 = vrot.slane %v861_v48, %v865_v47 }
  0x74   : > { %778 = vmatprep.subr.bf16.mxu0 %v1696_v21  ;;  %1099 = vmatprep.subr.bf16.mxu1 %v1783_v56  ;;  %v1741_v21 = vld [vmem:[#allocation3 + $0x180] ss:$8 sps:$4 sm:$0xff]   ;;  %p1894_p5 = por %p1893_p3, %p1892_p2 }
  0x76   : > { %p1895_p6 = pnand %p1894_p5, %p1888_p11 }
  0x77   : > { %779 = vmatpush1.bf16.msra.mxu0 %v1698_v22  ;;  %1100 = vmatpush1.bf16.msra.mxu1 %v1785_v59  ;;  %v1746_v22 = vld [vmem:[#allocation3 + $0x194] ss:$8 sps:$4 sm:$0xff]  }
  0x78   : > { %780 = vmatprep.subr.bf16.mxu0 %v1699_v23  ;;  %1101 = vmatprep.subr.bf16.mxu1 %v1786_v60  ;;  %v1744_v23 = vld [vmem:[#allocation3 + $0x190] ss:$8 sps:$4 sm:$0xff]  }
  0x7b   : > { %781 = vmatpush1.bf16.msra.mxu0 %v1701_v24  ;;  %1102 = vmatpush1.bf16.msra.mxu1 %v1788_v63  ;;  %v1749_v24 = vld [vmem:[#allocation3 + $0x1a4] ss:$8 sps:$4 sm:$0xff]  }
  0x7c   : > { %782 = vmatprep.subr.bf16.mxu0 %v1702_v25  ;;  %1103 = vmatprep.subr.bf16.mxu1 %v1789_v0  ;;  %v1747_v25 = vld [vmem:[#allocation3 + $0x1a0] ss:$8 sps:$4 sm:$0xff]  }
  0x7f   : > { %783 = vmatpush1.bf16.msra.mxu0 %v1704_v26  ;;  %1104 = vmatpush1.bf16.msra.mxu1 %v1791_v3  ;;  %v1752_v26 = vld [vmem:[#allocation3 + $0x1b4] ss:$8 sps:$4 sm:$0xff]   ;;  %v1815_v3 = vld [vmem:[#allocation6 + $0x48] sm:$0xff]  }
  0x80   : > { %784 = vmatprep.subr.bf16.mxu0 %v1705_v27  ;;  %1105 = vmatprep.subr.bf16.mxu1 %v1792_v4  ;;  %v1750_v27 = vld [vmem:[#allocation3 + $0x1b0] ss:$8 sps:$4 sm:$0xff]   ;;  %v1816_v4 = vld [vmem:[#allocation6 + $0x8] sm:$0xff]  }
  0x83   : > { %785 = vmatpush1.bf16.msra.mxu0 %v1707_v30  ;;  %1106 = vmatpush1.bf16.msra.mxu1 %v1794_v7  ;;  %v1758_v30 = vld [vmem:[#allocation3 + $0x1d4] ss:$8 sps:$4 sm:$0xff]  }
  0x84   : > { %786 = vmatprep.subr.bf16.mxu0 %v1708_v32  ;;  %1107 = vmatprep.subr.bf16.mxu1 %v1795_v8  ;;  %v1761_v32 = vld [vmem:[#allocation3 + $0x1e4] ss:$8 sps:$4 sm:$0xff]   ;;  %v1819_v7 = vld [vmem:[#allocation6 + $0x58] sm:$0xff]  }
  0x85   : > { %v1820_v8 = vld [vmem:[#allocation6 + $0x18] sm:$0xff]  }
  0x87   : > { %787 = vmatpush1.bf16.msra.mxu0 %v1710_v35  ;;  %1108 = vmatpush1.bf16.msra.mxu1 %v1797_v11  ;;  %v1762_v35 = vld [vmem:[#allocation3 + $0x1f0] ss:$8 sps:$4 sm:$0xff]   ;;  %v1823_v11 = vld [vmem:[#allocation6 + $0x68] sm:$0xff]  }
  0x88   : > { %788 = vmatprep.subr.bf16.mxu0 %v1711_v36  ;;  %1109 = vmatprep.subr.bf16.mxu1 %v1798_v12  ;;  %v362_v36 = vld [vmem:[%s2156_s23 + $0x10] sm:$0xff]  ;;  %v1824_v12 = vld [vmem:[#allocation6 + $0x28] sm:$0xff]  }
  0x89   : > { %v370_v38 = vpack.c.bf16 %v366_v37, %v362_v36 }
  0x8b   : > { %789 = vmatpush1.bf16.msra.mxu0 %v1713_v39  ;;  %1110 = vmatpush1.bf16.msra.mxu1 %v1800_v15  ;;  %v1806_v39 = vld [vmem:[%s2329_s3 + $0xd0] ss:$8 sps:$4 sm:$0xff]  }
  0x8c   : > { %790 = vmatprep.subr.bf16.mxu0 %v1714_v40  ;;  %1111 = vmatprep.subr.bf16.mxu1 %v1801_v16  ;;  %v1807_v40 = vld [vmem:[%s2329_s3 + $0xe4] ss:$8 sps:$4 sm:$0xff]   ;;  %v1827_v15 = vld [vmem:[#allocation6 + $0x78] sm:$0xff]  }
  0x8d   : > { %v1828_v16 = vld [vmem:[#allocation6 + $0x38] sm:$0xff]  }
  0x8f   : > { %791 = vmatpush1.bf16.msra.mxu0 %v1716_v41  ;;  %1112 = vmatpush1.bf16.msra.mxu1 %v1803_v19  ;;  %v1809_v41 = vld [vmem:[%s2329_s3 + $0xe0] ss:$8 sps:$4 sm:$0xff]  }
  0x90   : > { %803 = vmatprep.subr.bf16.mxu0 %v1719_v43  ;;  %1113 = vmatprep.subr.bf16.mxu1 %v1804_v20  ;;  %v1812_v43 = vld [vmem:[%s2329_s3 + $0xf0] ss:$8 sps:$4 sm:$0xff]  }
  0x92   : > { %793 = vmatmul.mubr.bf16.vlgmr.msra.gmra.mrb[0].mxu0 %v368_v51 }
  0x93   : > { %804 = vmatpush1.bf16.msra.mxu0 %v1717_v49  ;;  %835 = vmatprep.mubr.bf16.mxu0 %v371_v54  ;;  %v869_v49 = vsub.s32 1, %v864_v46 }
  0x94   : > { %805 = vmatprep.subr.bf16.mxu0 %v1722_v52  ;;  %1114 = vmatpush1.bf16.msra.mxu1 %v1806_v39 }
  0x95   : > { %1115 = vmatprep.subr.bf16.mxu1 %v1807_v40  ;;  %v870_v51 = vrot.slane %v861_v48, %v869_v49 }
  0x97   : > { %806 = vmatpush1.bf16.msra.mxu0 %v1720_v57 }
  0x98   : > { %807 = vmatprep.subr.bf16.mxu0 %v1725_v58  ;;  %1116 = vmatpush1.bf16.msra.mxu1 %v1809_v41 }
  0x99   : > { %1117 = vmatprep.subr.bf16.mxu1 %v1810_v42 }
  0x9b   : > { %808 = vmatpush1.bf16.msra.mxu0 %v1723_v61 }
  0x9c   : > { %809 = vmatprep.subr.bf16.mxu0 %v1728_v62  ;;  %1118 = vmatpush1.bf16.msra.mxu1 %v1812_v43 }
  0x9d   : > { %1561 = vmatprep.subr.bf16.mxu1 %v1813_v44 }
  0x9f   : > { %810 = vmatpush1.bf16.msra.mxu0 %v1726_v1 }
  0xa0   : > { %811 = vmatprep.subr.bf16.mxu0 %v1731_v2  ;;  %v1814_v2 = vld [vmem:[#allocation6] sm:$0xff]  }
  0xa3   : > { %812 = vmatpush1.bf16.msra.mxu0 %v1729_v5  ;;  %v1817_v5 = vld [vmem:[#allocation6 + $0x50] sm:$0xff]  }
  0xa4   : > { %813 = vmatprep.subr.bf16.mxu0 %v1734_v6  ;;  %v1818_v6 = vld [vmem:[#allocation6 + $0x10] sm:$0xff]  }
  0xa7   : > { %814 = vmatpush1.bf16.msra.mxu0 %v1732_v9  ;;  %v1821_v9 = vld [vmem:[#allocation6 + $0x60] sm:$0xff]  }
  0xa8   : > { %815 = vmatprep.subr.bf16.mxu0 %v1737_v10  ;;  %v1822_v10 = vld [vmem:[#allocation6 + $0x20] sm:$0xff]  }
  0xab   : > { %816 = vmatpush1.bf16.msra.mxu0 %v1735_v13  ;;  %v1825_v13 = vld [vmem:[#allocation6 + $0x70] sm:$0xff]  }
  0xac   : > { %817 = vmatprep.subr.bf16.mxu0 %v1740_v14  ;;  %v1826_v14 = vld [vmem:[#allocation6 + $0x30] sm:$0xff]  }
  0xaf   : > { %818 = vmatpush1.bf16.msra.mxu0 %v1738_v17  ;;  %v915_v17 = vld [vmem:[%s2330_s4] sm:$0x3] }
  0xb0   : > { %819 = vmatprep.subr.bf16.mxu0 %v1743_v18  ;;  %v920_v18 = vrot.slane %v915_v17, %v865_v47  ;;  %v924_v19 = vrot.slane %v915_v17, %v869_v49 }
  0xb3   : > { %820 = vmatpush1.bf16.msra.mxu0 %v1741_v21 }
  0xb4   : > { %821 = vmatprep.subr.bf16.mxu0 %v1746_v22 }
  0xb7   : > { %822 = vmatpush1.bf16.msra.mxu0 %v1744_v23 }
  0xb8   : > { %823 = vmatprep.subr.bf16.mxu0 %v1749_v24 }
  0xbb   : > { %824 = vmatpush1.bf16.msra.mxu0 %v1747_v25 }
  0xbc   : > { %825 = vmatprep.subr.bf16.mxu0 %v1752_v26 }
  0xbf   : > { %826 = vmatpush1.bf16.msra.mxu0 %v1750_v27 }
  0xc0   : > { %827 = vmatprep.subr.bf16.mxu0 %v1755_v28 }
  0xc3   : > { %828 = vmatpush1.bf16.msra.mxu0 %v1753_v29 }
  0xc4   : > { %829 = vmatprep.subr.bf16.mxu0 %v1758_v30 }
  0xc7   : > { %830 = vmatpush1.bf16.msra.mxu0 %v1756_v31 }
  0xc8   : > { %831 = vmatprep.subr.bf16.mxu0 %v1761_v32 }
  0xcb   : > { %832 = vmatpush1.bf16.msra.mxu0 %v1759_v33 }
  0xcc   : > { %833 = vmatprep.subr.bf16.mxu0 %v1764_v34 }
  0xcf   : > { %834 = vmatpush1.bf16.msra.mxu0 %v1762_v35  ;;  %v1537_v35 = vld [vmem:[%s2332_s6] ss:$0 sm:$0xff] }
  0xd2   : > { %836 = vmatmul.mubr.bf16.vlgmr.msra.gmra.mrb[0].mxu0 %v370_v38 }
 0x1a5   : > { %v837_v52 = vpop.f32.mrb[0].mxu0 }
 0x1a6   : > { %v873_v53 = vadd.f32 %v866_v50, %v837_v52  ;;  %v839_v54 = vpop.f32.mrb[1].mxu0 }
 0x1a7   : > { %v874_v55 = vadd.f32 %v870_v51, %v839_v54  ;;  %v841_v56 = vpop.f32.mrb[2].mxu0 }
 0x1a8   : > { %v875_v57 = vadd.f32 %v866_v50, %v841_v56  ;;  %v843_v58 = vpop.f32.mrb[3].mxu0  ;;  %v877_v60 = vmax.f32 %v873_v53, 0.0 }
 0x1a9   : > { %v876_v59 = vadd.f32 %v870_v51, %v843_v58  ;;  %v878_v62 = vmax.f32 %v874_v55, 0.0 }
 0x1aa   : > { %v879_v61 = vmax.f32 %v875_v57, 0.0 }
 0x1ab   : > { %v880_v63 = vmax.f32 %v876_v59, 0.0 }
 0x1ac   : > { %v881_v0 = vpack.c.bf16 %v879_v61, %v877_v60 }
 0x1ad   : > { %v882_v1 = vpack.c.bf16 %v880_v63, %v878_v62 }
 0x1af   : > { %1119 = vmatprep.mubr.bf16.mxu1 %v882_v1 }
 0x1b0   : > { %1120 = vmatmul.mubr.bf16.vlgmr.msra.gmra.mrb[0].mxu1 %v881_v0 }
 0x1b1   : > { %1562 = vmatpush3.bf16.msra.mxu1 %v1814_v2 }
 0x1b2   : > { %1563 = vmatprep.subr.bf16.mxu1 %v1815_v3 }
 0x1b5   : > { %1564 = vmatpush3.bf16.msra.mxu1 %v1816_v4 }
 0x1b6   : > { %1565 = vmatprep.subr.bf16.mxu1 %v1817_v5 }
 0x1b9   : > { %1566 = vmatpush3.bf16.msra.mxu1 %v1818_v6 }
 0x1ba   : > { %1567 = vmatprep.subr.bf16.mxu1 %v1819_v7 }
 0x1bd   : > { %1568 = vmatpush3.bf16.msra.mxu1 %v1820_v8 }
 0x1be   : > { %1569 = vmatprep.subr.bf16.mxu1 %v1821_v9 }
 0x1c1   : > { %1570 = vmatpush3.bf16.msra.mxu1 %v1822_v10 }
 0x1c2   : > { %1571 = vmatprep.subr.bf16.mxu1 %v1823_v11 }
 0x1c5   : > { %1572 = vmatpush3.bf16.msra.mxu1 %v1824_v12 }
 0x1c6   : > { %1573 = vmatprep.subr.bf16.mxu1 %v1825_v13 }
 0x1c9   : > { %1574 = vmatpush3.bf16.msra.mxu1 %v1826_v14 }
 0x1ca   : > { %1575 = vmatprep.subr.bf16.mxu1 %v1827_v15 }
 0x1cd   : > { %1576 = vmatpush3.bf16.msra.mxu1 %v1828_v16 }
 0x283   : > { %v1121_v20 = vpop.f32.mrb[0].mxu1 }
 0x284   : > { %v1122_v21 = vadd.f32 %v1121_v20, %v920_v18  ;;  %v1123_v22 = vpop.f32.mrb[1].mxu1 }
 0x285   : > { %v1124_v23 = vadd.f32 %v1123_v22, %v924_v19  ;;  %v1125_v24 = vpop.f32.mrb[2].mxu1 }
 0x286   : > { %v1126_v25 = vadd.f32 %v1125_v24, %v920_v18  ;;  %v1127_v26 = vpop.f32.mrb[3].mxu1  ;;  %v1130_v28 = vmax.f32 %v1122_v21, 0.0 }
 0x287   : > { %v1128_v27 = vadd.f32 %v1127_v26, %v924_v19  ;;  %v1131_v30 = vmax.f32 %v1124_v23, 0.0 }
 0x288   : > { %v1132_v29 = vmax.f32 %v1126_v25, 0.0 }
 0x289   : > { %v1133_v31 = vmax.f32 %v1128_v27, 0.0 }
 0x28a   : > { %v1134_v32 = vpack.c.bf16 %v1132_v29, %v1130_v28 }
 0x28b   : > { %v1135_v33 = vpack.c.bf16 %v1133_v31, %v1131_v30 }
 0x28d   : > { %1303 = vmatprep.mubr.bf16.mxu1 %v1135_v33 }
 0x28e   : > { %1304 = vmatmul.mubr.bf16.vlgmr.msra.gmra.mrb[4].mxu1 %v1134_v32 }
 0x361   : > { %v1577_v34 = vpop.f32.mrb[4].mxu1 }
 0x362   : > { %v1578_v36 = vpop.f32.mrb[5].mxu1 }
 0x363   : > { %v1579_v37 = vadd.f32 %v1578_v36, %v1577_v34  ;;  %v1580_v38 = vpop.f32.mrb[6].mxu1 }
 0x364   : > { %v1581_v39 = vpop.f32.mrb[7].mxu1 }
 0x365   : > { %v1306_v40 = vadd.f32 %v1579_v37, %v1537_v35  ;;  %v1582_v41 = vadd.f32 %v1581_v39, %v1580_v38 }
 0x367   : > { %1312 = vst [vmem:[%s336_s15] sm:$0xff] %v1306_v40  ;;  %v1309_v42 = vadd.f32 %v1582_v41, %v1537_v35 }
 0x369   : > { %1313 = vst [vmem:[%s336_s15 + $0x8] sm:$0xff] %v1309_v42 }
 0x36a   : > { %1898 = shalt.err (!%p1895_p6)
}
 0x36b   : > { %s1899_s20 = scalar_lea.hbm %s2278_s30, 256  ;;  %s1903_s9 = scalar_lea.hbm %s2333_s7, 512 }
 0x36c   : > { %p1900_p7 = scmp.ne.s32.totalorder %s2278_s30, %s1899_s20  ;;  %p1904_p0 = scmp.lt.u32.totalorder %s2278_s30, %s2333_s7 }
 0x36d   : > { %p1905_p1 = scmp.lt.u32.totalorder %s1903_s9, %s1899_s20  ;;  %p1907_p4 = scmp.lt.u32.totalorder %s1899_s20, %s2278_s30 }
 0x36e   : > { %p1901_p9 = pnand %p1900_p7, %p2350_p8 }
 0x36f   : > { %p1906_p13 = por %p1905_p1, %p1904_p0 }
 0x370   : > { %p1902_p12 = pneg %p1901_p9 }
 0x371   : > { %p1908_p10 = por %p1907_p4, %p1906_p13 }
 0x373   : > { %p1909_p11 = pnand %p1908_p10, %p1902_p12 }
 0x375   : > { %1912 = shalt.err (!%p1909_p11)
}
 0x376   : > { %s1980_s15 = smov 128   ;;  %s1981_s19 = smov 8  }
 0x377   : > { %1595 = dma.vmem_to_hbm [thread:$0]  (%p2350_p8), %s2273_s16, 256, %s2278_s30, %s2280_s8, %s1980_s15, %s1980_s15, %s1981_s19  }
 0x378 PF: > { %p1612_p2 = scmp.ge.s32.totalorder %s1971_s29, 2  ;;  %s1343_s21 = sand.u32 1, %s1951_s24  }
 0x379   : > { %p2351_p3 = scmp.ne.s32.totalorder %s2343_s13, 0  ;;  %s1344_s23 = scalar_lea.sflag [#allocation5], %s1343_s21 }
 0x37b   : > { %p1605_p5 = pnand %p1612_p2, %p2351_p3 }
 0x37d   : > { %1946 = dma.done.wait (!%p1605_p5), %s1344_s23, 256  }
 0x37e   : > { %1948 = vsyncadd (!%p1605_p5), %s1344_s23, 4294967040  ;;  %s22_s29 = sadd.s32 1, %s1971_s29   ;;  %s2352_s10 = sld [smem:[#allocation14_spill]] }
 0x37f   : > { %p19_p6 = scmp.ge.s32.totalorder %s22_s29, 4   ;;  %s2353_s27 = sld [smem:[#allocation12_spill]] }
 0x380   : > { %s2354_s28 = sld [smem:[#allocation13_spill]]  ;;  %s2355_s24 = smov %s1955_s25 }
 0x381   : > { %s2356_s25 = smov %s1959_s26  ;;  %21 = sbr.rel (!%p19_p6) target bundleno = 6 (0x6), region = 101 }
 0x384   : > { %s2357_s26 = smov %s2352_s10 }
 0x388   :  { %1349 = vsyncpa [#allocation4], 1 }
 0x389   :  { %1351 = vsyncpa [#allocation4 + $0x1], 1 }
 0x38a   :  { %1352 = vsyncpa [#allocation7], 1 }
 0x38b   :  { %1353 = vsyncpa [#allocation5], 1 }
 0x38c   :  { %1355 = vsyncpa [#allocation5 + $0x1], 1 }

</bundles_post_ra>
